<compile_context>
chip_gen: v7x
topology: tpu7x:2x2x1
jax: 0.10.0
libtpu: 0.0.40
codegen_flags: <defaults>
</compile_context>

<pallas_src>
import jax
import jax.numpy as jnp
from jax.experimental import pallas as pl
from jax.experimental.pallas import tpu as pltpu


# ----------------------------- Pallas kernel -------------------------------

def make_textmodel_kernel(B_tile, S, K, V, P, num_layers):
    """Kernel factory (all shape/config values are static Python ints)."""
    rows = B_tile * S   # rows of the phi matmul handled per grid step

    def kernel(*refs):
        # refs: ids, m_phi, b_phi, [rho_w, rho_b], w_f, b_f(SMEM), out
        ids_ref, m_ref, bphi_ref = refs[0], refs[1], refs[2]
        if num_layers > 0:
            rho_w_ref, rho_b_ref = refs[3], refs[4]
            wf_ref, bf_ref, out_ref = refs[5], refs[6], refs[7]
        else:
            rho_w_ref = rho_b_ref = None
            wf_ref, bf_ref, out_ref = refs[3], refs[4], refs[5]

        ids = ids_ref[...]                                    # (rows, K) int32

        # One-hot selector (rows, K*V): column k*V + v is set iff
        # ids[row, k] == v.  Built with boolean OR across k and ONE final cast
        # directly into the matmul operand dtype (bf16 on the optimized path).
        lane = jax.lax.broadcasted_iota(jnp.int32, (rows, K * V), 1)
        hit = lane == ids[:, 0:1]
        for k in range(1, K):                                 # K is tiny & static
            hit = hit | (lane == (ids[:, k:k + 1] + k * V))
        onehot = hit.astype(m_ref.dtype)

        # Fused (embedding gather o phi Linear): ONE MXU matmul, f32 accumulate.
        h = jnp.dot(onehot, m_ref[...], preferred_element_type=jnp.float32)
        h = jnp.tanh(h + bphi_ref[...])                       # (rows, P) f32

        # Permutation-invariant pooling: sum over the sequence axis (dim=1).
        s = jnp.sum(h.reshape(B_tile, S, P), axis=1)          # (B_tile, P) f32

        # rho MLP: [Linear + Tanh] * num_layers, weights packed as (L, P, P).
        # TODO(synk): switch to lax.fori_loop(..., unroll=True) with dynamic
        # rho_w_ref[i] indexing if num_layers grows beyond a few (vreg pressure).
        for i in range(num_layers):
            s = jnp.tanh(
                jnp.dot(s.astype(m_ref.dtype), rho_w_ref[i],
                        preferred_element_type=jnp.float32)
                + rho_b_ref[i])

        # Final Linear(-, 1): VPU multiply + lane reduce (skip the N=1 MXU
        # matmul; padded columns of s / w_f are exactly zero so they add 0).
        out = jnp.sum(s * wf_ref[...], axis=-1, keepdims=True) + bf_ref[0]
        out_ref[...] = out.astype(out_ref.dtype)              # (B_tile, 1)

    return kernel


# ---------------------- parameter folding / packing ------------------------

def fold_params(emb_table, w_phi, b_phi, rho_params, w_f, b_f,
                weight_dtype=jnp.bfloat16):
    """One-time parameter transform (the embedding is frozen in the module):
    folds E into the phi weights (so gather+Linear becomes one matmul),
    zero-pads / stacks the rho layers into single arrays, and casts the
    matmul weights to `weight_dtype` (bf16 on the optimized path)."""
    V, d_per = emb_table.shape
    D_in, model_out = w_phi.shape
    K = D_in // d_per
    L = len(rho_params)
    num_neurons = rho_params[0][0].shape[1] if L > 0 else model_out
    P = max(model_out, num_neurons)        # common padded feature width

    # M[k*V + v, :] = E[v, :] @ w_phi[k*d_per:(k+1)*d_per, :]
    w_k = w_phi.reshape(K, d_per, model_out)
    m_phi = jnp.einsum("vj,kjo->kvo", emb_table, w_k).reshape(K * V, model_out)
    m_phi = jnp.pad(m_phi, ((0, 0), (0, P - model_out))).astype(weight_dtype)
    bphi = jnp.pad(b_phi, (0, P - model_out)).reshape(1, P).astype(jnp.float32)

    if L > 0:
        rho_w = jnp.stack([
            jnp.pad(w, ((0, P - w.shape[0]), (0, P - w.shape[1])))
            for (w, _) in rho_params]).astype(weight_dtype)   # (L, P, P)
        rho_b = jnp.stack([
            jnp.pad(b, (0, P - b.shape[0])).reshape(1, P)
            for (_, b) in rho_params]).astype(jnp.float32)    # (L, 1, P)
    else:
        rho_w = rho_b = None

    wf = jnp.pad(w_f[:, 0], (0, P - w_f.shape[0])).reshape(1, P).astype(weight_dtype)
    bf = b_f.reshape(1).astype(jnp.float32)                   # SMEM scalar, 1-D
    cfg = dict(K=K, V=V, P=P, L=L)
    return (m_phi, bphi, rho_w, rho_b, wf, bf), cfg


# ------------------------------ forward pass -------------------------------

def textmodel_forward(ids, folded, cfg, batch_tile=None):
    """`ids`: (B, S, K) int32 token indices.

    batch_tile=None -> a single grid step (fast path for tiny B).
    batch_tile=b    -> grid over the batch axis with "parallel" semantics
                       (b must divide B and b*S must be a multiple of 8);
                       weights use constant index_maps so they stay
                       VMEM-resident across grid steps.
    """
    m_phi, bphi, rho_w, rho_b, wf, bf = folded
    B, S, K = ids.shape
    V, P, L = cfg["V"], cfg["P"], cfg["L"]

    if batch_tile is None:
        batch_tile = B
    assert B % batch_tile == 0
    num_blocks = B // batch_tile
    rows = batch_tile * S
    assert batch_tile == B or (rows % 8 == 0 and batch_tile % 8 == 0)

    # Flatten outside the kernel (layout hygiene; no in-kernel operand reshape).
    ids_flat = ids.reshape(B * S, K)

    smem = pltpu.MemorySpace.SMEM

    in_specs = [
        pl.BlockSpec((rows, K), lambda i: (i, 0)),            # per-step ids tile
        pl.BlockSpec(m_phi.shape, lambda i: (0, 0)),          # VMEM-resident
        pl.BlockSpec(bphi.shape, lambda i: (0, 0)),
    ]
    operands = [ids_flat, m_phi, bphi]
    if L > 0:
        in_specs += [pl.BlockSpec(rho_w.shape, lambda i: (0, 0, 0)),
                     pl.BlockSpec(rho_b.shape, lambda i: (0, 0, 0))]
        operands += [rho_w, rho_b]
    in_specs += [pl.BlockSpec(wf.shape, lambda i: (0, 0)),
                 pl.BlockSpec(memory_space=smem)]             # (1,) scalar bias
    operands += [wf, bf]

    out = pl.pallas_call(
        make_textmodel_kernel(batch_tile, S, K, V, P, L),
        out_shape=jax.ShapeDtypeStruct((B, 1), jnp.float32),
        grid=(num_blocks,),
        in_specs=in_specs,
        out_specs=pl.BlockSpec((batch_tile, 1), lambda i: (i, 0)),
        compiler_params=pltpu.CompilerParams(
            dimension_semantics=("parallel",),
            # Fits v7x's 64 MiB VMEM (32 MiB scoped default) and is well
            # within v5e/v6e physical VMEM.
            vmem_limit_bytes=32 * 1024 * 1024,
        ),
    )(*operands)
    return out


# ------------------------- parameter construction --------------------------

def xavier_uniform(key, fan_in, fan_out):
    bound = (6.0 / (fan_in + fan_out)) ** 0.5
    return jax.random.uniform(key, (fan_in, fan_out), jnp.float32, -bound, bound)


def build_params(key, vocab_size, input_dim, janossy_k, num_layers, num_neurons):
    d_per = input_dim // janossy_k          # self.input_dim
    d_in = d_per * janossy_k                # self.input_dim_mod
    model_out = 30                          # 'mlp' branch: Linear(d_in, 30)

    keys = jax.random.split(key, 3 + num_layers)
    emb_table = jax.random.uniform(keys[0], (vocab_size, d_per),
                                   jnp.float32, -0.5, 0.5)
    w_phi = xavier_uniform(keys[1], d_in, model_out)     # stored (in, out)
    b_phi = jnp.zeros((model_out,), jnp.float32)

    rho_params = []
    in_dim = model_out
    for i in range(num_layers):
        w = xavier_uniform(keys[2 + i], in_dim, num_neurons)
        b = jnp.zeros((num_neurons,), jnp.float32)
        rho_params.append((w, b))
        in_dim = num_neurons

    final_in = model_out if num_layers == 0 else num_neurons
    w_f = xavier_uniform(keys[-1], final_in, 1)
    b_f = jnp.zeros((1,), jnp.float32)
    return emb_table, w_phi, b_phi, rho_params, w_f, b_f


# ------------------------------- reference ---------------------------------

def reference_forward(ids, emb_table, w_phi, b_phi, rho_params, w_f, b_f):
    """Pure-JAX reference mirroring the PyTorch forward (mlp branch)."""
    B, S, K = ids.shape
    d_per = emb_table.shape[1]
    x = jnp.take(emb_table, ids, axis=0).reshape(B, S, K * d_per)
    h = jnp.tanh(jnp.einsum("bsd,do->bso", x, w_phi) + b_phi)
    s = jnp.sum(h, axis=1)
    for (w, b) in rho_params:
        s = jnp.tanh(s @ w + b)
    return s @ w_f + b_f


if __name__ == "__main__":
    # small config consistent with the module's __init__
    vocab_size = 20
    input_dim = 32
    janossy_k = 2
    num_layers = 2
    num_neurons = 32
    B, S = 2, 8

    root = jax.random.PRNGKey(0)
    k_params, k_ids, k_ids2 = jax.random.split(root, 3)

    params = build_params(k_params, vocab_size, input_dim, janossy_k,
                          num_layers, num_neurons)
    ids = jax.random.randint(k_ids, (B, S, janossy_k), 0, vocab_size,
                             dtype=jnp.int32)
    ref = reference_forward(ids, *params)

    # 1) Strict-correctness path: f32 weights, single grid step.
    folded32, cfg32 = fold_params(*params, weight_dtype=jnp.float32)
    out32 = jax.block_until_ready(textmodel_forward(ids, folded32, cfg32))
    assert out32.shape == (B, 1)
    assert jnp.allclose(out32, ref, atol=1e-4, rtol=1e-4), (out32, ref)

    # 2) Optimized mixed-precision path: bf16 matmul weights, f32 accumulate.
    folded16, cfg16 = fold_params(*params, weight_dtype=jnp.bfloat16)
    out16 = jax.block_until_ready(textmodel_forward(ids, folded16, cfg16))
    assert out16.shape == (B, 1)
    assert jnp.allclose(out16, ref, atol=1e-1, rtol=1e-1), (out16, ref)

    # 3) Batch-gridded path: 'parallel' grid over batch, VMEM-resident weights.
    B2 = 32
    ids2 = jax.random.randint(k_ids2, (B2, S, janossy_k), 0, vocab_size,
                              dtype=jnp.int32)
    ref2 = reference_forward(ids2, *params)
    out2 = jax.block_until_ready(
        textmodel_forward(ids2, folded16, cfg16, batch_tile=8))
    assert out2.shape == (B2, 1)
    assert jnp.allclose(out2, ref2, atol=1e-1, rtol=1e-1), (out2, ref2)

    print("KERNEL_OK")
</pallas_src>

<mosaic_0001>
module attributes {stable_mosaic.version = 11 : i64} {
  func.func @kernel(%arg0: i32, %arg1: memref<16x2xi32, #tpu.memory_space<vmem>>, %arg2: memref<40x32xf32, #tpu.memory_space<vmem>>, %arg3: memref<1x32xf32, #tpu.memory_space<vmem>>, %arg4: memref<2x32x32xf32, #tpu.memory_space<vmem>>, %arg5: memref<2x1x32xf32, #tpu.memory_space<vmem>>, %arg6: memref<1x32xf32, #tpu.memory_space<vmem>>, %arg7: memref<1xf32, #tpu.memory_space<smem>>, %arg8: memref<2x1xf32, #tpu.memory_space<vmem>>) attributes {dimension_semantics = [#tpu.dimension_semantics<parallel>], iteration_bounds = array<i64: 1>, scalar_prefetch = 0 : i64, scratch_operands = 0 : i64, tpu.core_type = #tpu.core_type<tc>, window_params = [{transform_indices = @transform_0, window_bounds = array<i64: 16, 2>}, {pipeline_mode = #tpu.pipeline_mode<synchronous>, transform_indices = @transform_1, window_bounds = array<i64: 40, 32>}, {pipeline_mode = #tpu.pipeline_mode<synchronous>, transform_indices = @transform_2, window_bounds = array<i64: 1, 32>}, {pipeline_mode = #tpu.pipeline_mode<synchronous>, transform_indices = @transform_3, window_bounds = array<i64: 2, 32, 32>}, {pipeline_mode = #tpu.pipeline_mode<synchronous>, transform_indices = @transform_4, window_bounds = array<i64: 2, 1, 32>}, {pipeline_mode = #tpu.pipeline_mode<synchronous>, transform_indices = @transform_5, window_bounds = array<i64: 1, 32>}, {transform_indices = @transform_6, window_bounds = array<i64: 1>}, {transform_indices = @transform_7, window_bounds = array<i64: 2, 1>}]} {
    %c0 = arith.constant 0 : index
    %c0_0 = arith.constant 0 : index
    %0 = vector.load %arg1[%c0, %c0_0] : memref<16x2xi32, #tpu.memory_space<vmem>>, vector<16x2xi32>
    %1 = tpu.iota {dimensions = array<i32: 1>} : vector<16x40xi32>
    %2 = vector.extract_strided_slice %0 {offsets = [0, 0], sizes = [16, 1], strides = [1, 1]} : vector<16x2xi32> to vector<16x1xi32>
    %3 = vector.broadcast %2 : vector<16x1xi32> to vector<16x40xi32>
    %4 = arith.cmpi eq, %1, %3 : vector<16x40xi32>
    %5 = vector.extract_strided_slice %0 {offsets = [0, 1], sizes = [16, 1], strides = [1, 1]} : vector<16x2xi32> to vector<16x1xi32>
    %c20_i32 = arith.constant 20 : i32
    %6 = vector.broadcast %c20_i32 : i32 to vector<16x1xi32>
    %7 = arith.addi %5, %6 : vector<16x1xi32>
    %8 = vector.broadcast %7 : vector<16x1xi32> to vector<16x40xi32>
    %9 = arith.cmpi eq, %1, %8 : vector<16x40xi32>
    %10 = arith.ori %4, %9 : vector<16x40xi1>
    %11 = arith.extui %10 : vector<16x40xi1> to vector<16x40xi32>
    %12 = arith.sitofp %11 : vector<16x40xi32> to vector<16x40xf32>
    %c0_1 = arith.constant 0 : index
    %c0_2 = arith.constant 0 : index
    %13 = vector.load %arg2[%c0_1, %c0_2] : memref<40x32xf32, #tpu.memory_space<vmem>>, vector<40x32xf32>
    %cst = arith.constant dense<0.000000e+00> : vector<16x32xf32>
    %14 = tpu.matmul %12, %13, %cst {dimension_numbers = #tpu.dot_dimension_numbers<[1], [0], [0], [1], [0, 0, 1, 1], [], []>} : vector<16x40xf32>, vector<40x32xf32>, vector<16x32xf32> -> vector<16x32xf32>
    %c0_3 = arith.constant 0 : index
    %c0_4 = arith.constant 0 : index
    %15 = vector.load %arg3[%c0_3, %c0_4] : memref<1x32xf32, #tpu.memory_space<vmem>>, vector<1x32xf32>
    %16 = vector.broadcast %15 : vector<1x32xf32> to vector<16x32xf32>
    %17 = arith.addf %14, %16 : vector<16x32xf32>
    %18 = math.tanh %17 : vector<16x32xf32>
    %19 = vector.shape_cast %18 : vector<16x32xf32> to vector<2x8x32xf32>
    %cst_5 = arith.constant dense<0.000000e+00> : vector<2x32xf32>
    %20 = vector.multi_reduction <add>, %19, %cst_5 [1] : vector<2x8x32xf32> to vector<2x32xf32>
    %c0_6 = arith.constant 0 : index
    %c0_7 = arith.constant 0 : index
    %c0_8 = arith.constant 0 : index
    %21 = vector.load %arg4[%c0_6, %c0_7, %c0_8] : memref<2x32x32xf32, #tpu.memory_space<vmem>>, vector<1x32x32xf32>
    %22 = vector.shape_cast %21 : vector<1x32x32xf32> to vector<32x32xf32>
    %cst_9 = arith.constant dense<0.000000e+00> : vector<2x32xf32>
    %23 = tpu.matmul %20, %22, %cst_9 {dimension_numbers = #tpu.dot_dimension_numbers<[1], [0], [0], [1], [0, 0, 1, 1], [], []>} : vector<2x32xf32>, vector<32x32xf32>, vector<2x32xf32> -> vector<2x32xf32>
    %c0_10 = arith.constant 0 : index
    %c0_11 = arith.constant 0 : index
    %c0_12 = arith.constant 0 : index
    %24 = vector.load %arg5[%c0_10, %c0_11, %c0_12] : memref<2x1x32xf32, #tpu.memory_space<vmem>>, vector<1x1x32xf32>
    %25 = vector.shape_cast %24 : vector<1x1x32xf32> to vector<1x32xf32>
    %26 = vector.broadcast %25 : vector<1x32xf32> to vector<2x32xf32>
    %27 = arith.addf %23, %26 : vector<2x32xf32>
    %28 = math.tanh %27 : vector<2x32xf32>
    %c1 = arith.constant 1 : index
    %c0_13 = arith.constant 0 : index
    %c0_14 = arith.constant 0 : index
    %29 = vector.load %arg4[%c1, %c0_13, %c0_14] : memref<2x32x32xf32, #tpu.memory_space<vmem>>, vector<1x32x32xf32>
    %30 = vector.shape_cast %29 : vector<1x32x32xf32> to vector<32x32xf32>
    %cst_15 = arith.constant dense<0.000000e+00> : vector<2x32xf32>
    %31 = tpu.matmul %28, %30, %cst_15 {dimension_numbers = #tpu.dot_dimension_numbers<[1], [0], [0], [1], [0, 0, 1, 1], [], []>} : vector<2x32xf32>, vector<32x32xf32>, vector<2x32xf32> -> vector<2x32xf32>
    %c1_16 = arith.constant 1 : index
    %c0_17 = arith.constant 0 : index
    %c0_18 = arith.constant 0 : index
    %32 = vector.load %arg5[%c1_16, %c0_17, %c0_18] : memref<2x1x32xf32, #tpu.memory_space<vmem>>, vector<1x1x32xf32>
    %33 = vector.shape_cast %32 : vector<1x1x32xf32> to vector<1x32xf32>
    %34 = vector.broadcast %33 : vector<1x32xf32> to vector<2x32xf32>
    %35 = arith.addf %31, %34 : vector<2x32xf32>
    %36 = math.tanh %35 : vector<2x32xf32>
    %c0_19 = arith.constant 0 : index
    %c0_20 = arith.constant 0 : index
    %37 = vector.load %arg6[%c0_19, %c0_20] : memref<1x32xf32, #tpu.memory_space<vmem>>, vector<1x32xf32>
    %38 = vector.broadcast %37 : vector<1x32xf32> to vector<2x32xf32>
    %39 = arith.mulf %36, %38 : vector<2x32xf32>
    %cst_21 = arith.constant dense<0.000000e+00> : vector<2xf32>
    %40 = vector.multi_reduction <add>, %39, %cst_21 [1] : vector<2x32xf32> to vector<2xf32>
    %41 = vector.shape_cast %40 : vector<2xf32> to vector<2x1xf32>
    %c0_22 = arith.constant 0 : index
    %42 = memref.load %arg7[%c0_22] : memref<1xf32, #tpu.memory_space<smem>>
    %43 = vector.broadcast %42 : f32 to vector<2x1xf32>
    %44 = arith.addf %41, %43 : vector<2x1xf32>
    %c0_23 = arith.constant 0 : index
    %c0_24 = arith.constant 0 : index
    %45 = vector.load %arg8[%c0_23, %c0_24] : memref<2x1xf32, #tpu.memory_space<vmem>>, vector<2x1xf32>
    tpu.vector_store %arg8[%c0_23, %c0_24], %44 {strides = array<i32>} : memref<2x1xf32, #tpu.memory_space<vmem>>, vector<2x1xf32>,
    return
  }
  func.func @transform_0(%arg0: i32) -> (i32, i32) {
    %c0_i32 = arith.constant 0 : i32
    %c0_i32_0 = arith.constant 0 : i32
    return %arg0, %c0_i32 : i32, i32
  }
  func.func @transform_1(%arg0: i32) -> (i32, i32) {
    %c0_i32 = arith.constant 0 : i32
    %c0_i32_0 = arith.constant 0 : i32
    %c0_i32_1 = arith.constant 0 : i32
    return %c0_i32, %c0_i32_0 : i32, i32
  }
  func.func @transform_2(%arg0: i32) -> (i32, i32) {
    %c0_i32 = arith.constant 0 : i32
    %c0_i32_0 = arith.constant 0 : i32
    %c0_i32_1 = arith.constant 0 : i32
    return %c0_i32, %c0_i32_0 : i32, i32
  }
  func.func @transform_3(%arg0: i32) -> (i32, i32, i32) {
    %c0_i32 = arith.constant 0 : i32
    %c0_i32_0 = arith.constant 0 : i32
    %c0_i32_1 = arith.constant 0 : i32
    %c0_i32_2 = arith.constant 0 : i32
    return %c0_i32, %c0_i32_0, %c0_i32_1 : i32, i32, i32
  }
  func.func @transform_4(%arg0: i32) -> (i32, i32, i32) {
    %c0_i32 = arith.constant 0 : i32
    %c0_i32_0 = arith.constant 0 : i32
    %c0_i32_1 = arith.constant 0 : i32
    %c0_i32_2 = arith.constant 0 : i32
    return %c0_i32, %c0_i32_0, %c0_i32_1 : i32, i32, i32
  }
  func.func @transform_5(%arg0: i32) -> (i32, i32) {
    %c0_i32 = arith.constant 0 : i32
    %c0_i32_0 = arith.constant 0 : i32
    %c0_i32_1 = arith.constant 0 : i32
    return %c0_i32, %c0_i32_0 : i32, i32
  }
  func.func @transform_6(%arg0: i32) -> i32 {
    %c0_i32 = arith.constant 0 : i32
    %c0_i32_0 = arith.constant 0 : i32
    return %c0_i32 : i32
  }
  func.func @transform_7(%arg0: i32) -> (i32, i32) {
    %c0_i32 = arith.constant 0 : i32
    %c0_i32_0 = arith.constant 0 : i32
    return %arg0, %c0_i32 : i32, i32
  }
}

</mosaic_0001>

<bundles_post_ra>
// kernel: tpu_custom_call.1
= control target key start
LH: loop header
LB: loop body
LE: loop exit
PB: predicated region body
PF: predicated region fallthrough
CT: control target
= control target key end

     0   :  { %v466_v0 = vmov 0   ;;  %v467_v11 = vmov 1   ;;  %v29_v13 = vlaneseq  ;;  %vm67_vm5 = vcmask 326656   ;;  %s580_s0 = inlined_call_operand.vmem [shape: s32[16,2], index: 0, kind: input, shape index: {}]   ;;  %s581_s1 = inlined_call_operand.vmem [shape: f32[40,32], index: 1, kind: input, shape index: {}]   ;;  %s582_s3 = inlined_call_operand.vmem [shape: f32[2,32,32], index: 3, kind: input, shape index: {}]   ;;  %s583_s2 = inlined_call_operand.vmem [shape: f32[1,32], index: 2, kind: input, shape index: {}]   ;;  %s584_s4 = inlined_call_operand.vmem [shape: f32[2,1,32], index: 4, kind: input, shape index: {}]   ;;  %s585_s5 = inlined_call_operand.vmem [shape: f32[1,32], index: 5, kind: input, shape index: {}]   ;;  %s586_s6 = inlined_call_operand.<no memory space> [shape: f32[1], index: 6, kind: input, shape index: {}]   ;;  %s587_s7 = inlined_call_operand.vmem [shape: f32[2,1], index: 7, kind: output, shape index: {}]  }
   0x1   :  { %456 = vset.pattern.permute.xlu1 %v466_v0  ;;  %454 = vset.pattern.permute.xlu0 %v466_v0  ;;  %v28_v1 = vld [vmem:[%s580_s0 + $0x8] sm:$0xff]  ;;  %v27_v2 = vld [vmem:[%s580_s0] sm:$0xff]  ;;  %v57_v5 = vld [vmem:[%s581_s1 + $0x10] sm:$0xff]  ;;  %v468_v19 = vmov 0.0   ;;  %v469_v22 = vmov 0.0|0.0   ;;  %vm470_vm7 = vmmov 0  }
   0x2   :  { %v55_v3 = vld [vmem:[%s581_s1] sm:$0xff]  ;;  %35 = vperm.xlu1 %456, %v28_v1   ;;  %32 = vperm.xlu0 %454, %v27_v2   ;;  %v56_v4 = vld [vmem:[%s581_s1 + $0x8] sm:$0xff]  ;;  %v58_v6 = vld [vmem:[%s581_s1 + $0x18] sm:$0xff]  ;;  %v40_v7 = vadd.s32 20, %v28_v1  ;;  %v39_v8 = vadd.s32 20, %v27_v2  ;;  %v30_v16 = vand.u32 127, %v29_v13 }
   0x3   :  { %v429_v9 = vpack.c.bf16 %v56_v4, %v55_v3  ;;  %v433_v10 = vpack.c.bf16 %v58_v6, %v57_v5  ;;  %v59_v12 = vld [vmem:[%s581_s1 + $0x20] sm:$0xff]  ;;  %437 = vmatprep.subr.bf16.mxu1 %v469_v22  ;;  %v167_v24 = vld [vmem:[%s582_s3 + $0x8] sm:$0xff]  ;;  %v168_v25 = vld [vmem:[%s582_s3 + $0x10] sm:$0xff]  ;;  %415 = vmatprep.mubr.msk.f32.mxu1 %vm470_vm7, %v468_v19  ;;  %vm151_vm8 = vcmask 261120   ;;  %vm179_vm9 = vcmask 1041409  }
   0x4   :  { %v166_v23 = vld [vmem:[%s582_s3] sm:$0xff]  ;;  %v169_v27 = vld [vmem:[%s582_s3 + $0x18] sm:$0xff]  ;;  %v370_v52 = vld [vmem:[%s582_s3 + $0x28] sm:$0xff]  ;;  %vm349_vm10 = vcmask 254976   ;;  %v354_v6 = vstv %s586_s6  ;;  %vm356_vm11 = vcmask 1024  }
   0x5   :  { %430 = vmatprep.subr.bf16.mxu0 %v429_v9  ;;  %v438_v26 = vpack.c.bf16 %v167_v24, %v166_v23  ;;  %v441_v28 = vpack.c.bf16 %v169_v27, %v168_v25  ;;  %v364_v29 = vld [vmem:[%s583_s2] ss:$0 sm:$0xff]  ;;  %v371_v53 = vld [vmem:[%s582_s3 + $0x30] sm:$0xff]  ;;  %v372_v55 = vld [vmem:[%s582_s3 + $0x38] sm:$0xff] }
   0x6   :  { %457 = vset.pattern.permute.xlu1 %v467_v11  ;;  %455 = vset.pattern.permute.xlu0 %v467_v11  ;;  %v369_v51 = vld [vmem:[%s582_s3 + $0x20] sm:$0xff]  ;;  %v447_v56 = vpack.c.bf16 %v372_v55, %v371_v53 }
   0x7   :  { %45 = vperm.xlu1 %457, %v40_v7   ;;  %42 = vperm.xlu0 %455, %v39_v8   ;;  %v444_v54 = vpack.c.bf16 %v370_v52, %v369_v51  ;;  %v367_v57 = vld [vmem:[%s584_s4] ss:$0 sm:$0xff]  ;;  %v374_v62 = vld [vmem:[%s584_s4 + $0x1] ss:$0 sm:$0xff] }
   0x8   :  { %432 = vmatpush3.bf16.msra.mxu0 %v429_v9  ;;  %439 = vmatpush3.bf16.msra.mxu1 %v438_v26  ;;  %v376_v2 = vld [vmem:[%s585_s5] ss:$0 sm:$0xff] }
   0x9   :  { %434 = vmatprep.subr.bf16.mxu0 %v433_v10  ;;  %440 = vmatprep.subr.bf16.mxu1 %v469_v22 }
   0xc   :  { %436 = vmatpush3.bf16.msra.mxu0 %v433_v10  ;;  %442 = vmatpush3.bf16.msra.mxu1 %v441_v28 }
   0xd   :  { %402 = vmatprep.subr.mxu0 %v59_v12  ;;  %443 = vmatprep.subr.bf16.mxu1 %v469_v22 }
  0x10   :  { %403 = vmatpush3.msra.mxu0 %v59_v12 }
  0x81   :  { %v33_v14 = vpop.permute.xlu0 %32  ;;  %v36_v15 = vpop.permute.xlu1 %35 }
  0x82   :  { %vm38_vm0 = vcmp.eq.s32.totalorder %v30_v16, %v36_v15  ;;  %vm37_vm3 = vcmp.eq.s32.totalorder %v30_v16, %v33_v14 }
  0x86   :  { %v46_v17 = vpop.permute.xlu1 %45  ;;  %v43_v18 = vpop.permute.xlu0 %42 }
  0x87   :  { %vm48_vm1 = vcmp.eq.s32.totalorder %v30_v16, %v46_v17  ;;  %vm47_vm2 = vcmp.eq.s32.totalorder %v30_v16, %v43_v18 }
  0x88   :  { %vm50_vm4 = vmor %vm38_vm0, %vm48_vm1 }
  0x89   :  { %v363_v20 = vsel %vm50_vm4, 1.0, %v468_v19  ;;  %vm49_vm6 = vmor %vm37_vm3, %vm47_vm2 }
  0x8a   :  { %v362_v21 = vsel %vm49_vm6, 1.0, %v468_v19 }
  0x8b   :  { %404 = vmatprep.mubr.msk.f32.mxu0 %vm67_vm5, %v362_v21 }
  0x8c   :  { %405 = vmatmul.mubr.msk.f32.vlgmr.msra.gmra.mrb[0].mxu0 %vm67_vm5, %v363_v20 }
 0x15f   :  { %v406_v30 = vpop.f32.mrb[0].mxu0 }
 0x160   :  { %v146_v31 = vadd.f32 %v406_v30, %v364_v29  ;;  %v140_v32 = vpop.f32.mrb[1].mxu0 }
 0x161   :  { %v141_v33 = vadd.f32 %v364_v29, %v140_v32 }
 0x162   :  { %458 = vtanh.f32 %v146_v31 }
 0x163   :  { %460 = vtanh.f32 %v141_v33 }
 0x16c   :  { %v459_v34 = vpop.eup %458 }
 0x16d   :  { %v461_v35 = vpop.eup %460  ;;  %v159_v36 = vsel %vm151_vm8, %v459_v34, 0.0 }
 0x16e   :  { %v152_v37 = vsel %vm151_vm8, %v461_v35, 0.0  ;;  %v160_v38 = vrot.slane %v159_v36, 4 }
 0x16f   :  { %v153_v39 = vrot.slane %v152_v37, 4 }
 0x170   :  { %v161_v40 = vadd.f32 %v160_v38, %v159_v36 }
 0x171   :  { %v154_v41 = vadd.f32 %v153_v39, %v152_v37 }
 0x172   :  { %v162_v42 = vrot.slane %v161_v40, 2 }
 0x173   :  { %v155_v43 = vrot.slane %v154_v41, 2 }
 0x174   :  { %v163_v44 = vadd.f32 %v162_v42, %v161_v40 }
 0x175   :  { %v156_v45 = vadd.f32 %v155_v43, %v154_v41 }
 0x176   :  { %v164_v46 = vrot.slane %v163_v44, 1 }
 0x177   :  { %v157_v47 = vrot.slane %v156_v45, 1 }
 0x178   :  { %v165_v48 = vadd.f32 %v164_v46, %v163_v44 }
 0x179   :  { %v158_v49 = vadd.f32 %v157_v47, %v156_v45 }
 0x17b   :  { %v180_v50 = vsel %vm179_vm9, %v165_v48, %v158_v49 }
 0x17c   :  { %416 = vmatmul.mubr.msk.f32.vlgmr.msra.gmra.mrb[0].mxu1 %vm151_vm8, %v180_v50 }
 0x17d   :  { %426 = vmatprep.mubr.msk.f32.mxu1 %vm470_vm7, %v468_v19  ;;  %445 = vmatpush3.bf16.msra.mxu1 %v444_v54 }
 0x17e   :  { %446 = vmatprep.subr.bf16.mxu1 %v469_v22 }
 0x181   :  { %448 = vmatpush3.bf16.msra.mxu1 %v447_v56 }
 0x24f   :  { %v249_v58 = vpop.f32.mrb[0].mxu1 }
 0x250   :  { %v250_v59 = vadd.f32 %v367_v57, %v249_v58  ;;  %v417_v60 = vpop.f32.mrb[1].mxu1 }
 0x252   :  { %462 = vtanh.f32 %v250_v59 }
 0x25c   :  { %v463_v61 = vpop.eup %462 }
 0x25d   :  { %427 = vmatmul.mubr.msk.f32.vlgmr.msra.gmra.mrb[2].mxu1 %vm151_vm8, %v463_v61 }
 0x330   :  { %v336_v63 = vpop.f32.mrb[2].mxu1 }
 0x331   :  { %v337_v0 = vadd.f32 %v374_v62, %v336_v63  ;;  %v428_v1 = vpop.f32.mrb[3].mxu1 }
 0x333   :  { %464 = vtanh.f32 %v337_v0 }
 0x33d   :  { %v465_v3 = vpop.eup %464 }
 0x33e   :  { %v348_v4 = vmul.f32 %v465_v3, %v376_v2 }
 0x340   :  { %v350_v5 = vsel %vm349_vm10, %v348_v4, 0.0 }
 0x341   :  { %351 = vadd.xlane.f32.xlu1 %v350_v5 }
 0x3ce   :  { %v352_v7 = vpop.xlane.xlu1 %351 }
 0x3cf   :  { %v355_v8 = vadd.f32 %v354_v6, %v352_v7 }
 0x3d1   :  { %357 = vst.msk [vmem:[%s587_s7] sm:$0x3] %vm356_vm11, %v355_v8 }

</bundles_post_ra>
